<compile_context>
chip_gen: v7x
topology: tpu7x:2x2x1
jax: 0.10.0
libtpu: 0.0.40
codegen_flags: <defaults>
</compile_context>

<pallas_src>
import functools

import jax
import jax.numpy as jnp
from jax.experimental import pallas as pl
from jax.experimental.pallas import tpu as pltpu


def _round_up(x, m):
    return ((x + m - 1) // m) * m


# ----------------------------------------------------------------------------
# Kernel: fused 3x (matmul + bias) with ReLU between layers.  All three GEMMs
# and the elementwise work run on-chip per row-tile; weights/biases stay
# resident in VMEM across grid steps (constant index_map -> no re-fetch).
# ----------------------------------------------------------------------------
def _text_encoder_kernel(x_ref, w1_ref, b1_ref, w2_ref, b2_ref, w3_ref, b3_ref,
                         o_ref):
    # Layer 1: MXU matmul in the storage dtype (bf16 stays bf16), f32 accum.
    h = jnp.dot(x_ref[...], w1_ref[...], preferred_element_type=jnp.float32)
    h = jnp.maximum(h + b1_ref[...], 0.0)              # bias + ReLU in f32

    # Layer 2 (cast activation back to the weight dtype before the MXU).
    h = jnp.dot(h.astype(w2_ref.dtype), w2_ref[...],
                preferred_element_type=jnp.float32)
    h = jnp.maximum(h + b2_ref[...], 0.0)

    # Layer 3.
    y = jnp.dot(h.astype(w3_ref.dtype), w3_ref[...],
                preferred_element_type=jnp.float32)
    y = y + b3_ref[...]

    o_ref[...] = y.astype(o_ref.dtype)


def _pick_row_tile(in_p, emb_p, hid_p, out_p, itemsize, sublane):
    """Largest row tile (<=512) whose working set fits a conservative VMEM budget."""
    budget = 24 << 20  # conservative vs. 32 MiB scoped limit (v6e/v7x default)
    # Resident weights / biases (x2 safety for pipeline buffers).
    resident = 2 * itemsize * (in_p * emb_p + emb_p * hid_p + hid_p * out_p)
    resident += 2 * 4 * (emb_p + hid_p + out_p)
    avail = max(budget - resident, 2 << 20)
    # Per-row working set: double-buffered x & out tiles + f32 intermediates.
    per_row = 2 * itemsize * in_p + 2 * itemsize * out_p + 4 * (emb_p + hid_p + out_p)
    cap = max(avail // per_row, sublane)
    tile = min(512, cap)
    tile = max((tile // sublane) * sublane, sublane)
    return int(tile)


@functools.partial(jax.jit, static_argnames=("row_tile",))
def text_encoder_forward(x, params, *, row_tile=None):
    """TextEncoder forward pass via a Pallas TPU kernel.

    Args:
      x: [batch, seq, input_dim] array (f32 or bf16).
      params: dict with w1 [in,emb], b1 [emb], w2 [emb,hid], b2 [hid],
              w3 [hid,out], b3 [out].
      row_tile: optional rows-per-grid-step override (sublane-aligned).

    Returns:
      [batch, seq, output_dim] array, same dtype as x.
    """
    batch, seq, input_dim = x.shape
    embed_dim = params["w1"].shape[1]
    hidden_dim = params["w2"].shape[1]
    output_dim = params["w3"].shape[1]

    dtype = x.dtype
    itemsize = jnp.dtype(dtype).itemsize
    sublane = 8 if itemsize >= 4 else 32 // itemsize  # 8 f32 / 16 bf16 / 32 i8

    # Lane-dense padding of every feature dim to a multiple of 128.
    in_p = _round_up(input_dim, 128)
    emb_p = _round_up(embed_dim, 128)
    hid_p = _round_up(hidden_dim, 128)
    out_p = _round_up(output_dim, 128)

    rows = batch * seq
    if row_tile is None:
        row_tile = _pick_row_tile(in_p, emb_p, hid_p, out_p, itemsize, sublane)
    # Never make the tile larger than the (sublane-aligned) problem.
    row_tile = min(int(row_tile), _round_up(rows, sublane))
    row_tile = max((row_tile // sublane) * sublane, sublane)
    rows_p = _round_up(rows, row_tile)
    grid = (rows_p // row_tile,)

    # Zero-pad x (rows + feature dim).  Zero padding is exact: padded input
    # columns hit zero weight rows, padded hidden columns get zero bias and
    # ReLU(0)=0, padded output columns are sliced off below.
    x2d = x.reshape(rows, input_dim)
    x2d = jnp.pad(x2d, ((0, rows_p - rows), (0, in_p - input_dim)))

    def _pad_w(w, r, c):
        return jnp.pad(w.astype(dtype), ((0, r - w.shape[0]), (0, c - w.shape[1])))

    def _pad_b(b, c):
        return jnp.pad(b.astype(jnp.float32), (0, c - b.shape[0])).reshape(1, c)

    w1 = _pad_w(params["w1"], in_p, emb_p)
    w2 = _pad_w(params["w2"], emb_p, hid_p)
    w3 = _pad_w(params["w3"], hid_p, out_p)
    b1 = _pad_b(params["b1"], emb_p)
    b2 = _pad_b(params["b2"], hid_p)
    b3 = _pad_b(params["b3"], out_p)

    flops = 2 * rows_p * (in_p * emb_p + emb_p * hid_p + hid_p * out_p)
    bytes_accessed = (
        (rows_p * in_p + in_p * emb_p + emb_p * hid_p + hid_p * out_p
         + rows_p * out_p) * itemsize
        + (emb_p + hid_p + out_p) * 4)
    cost = pl.CostEstimate(flops=flops, transcendentals=0,
                           bytes_accessed=bytes_accessed)

    out2d = pl.pallas_call(
        _text_encoder_kernel,
        out_shape=jax.ShapeDtypeStruct((rows_p, out_p), dtype),
        grid_spec=pltpu.PrefetchScalarGridSpec(
            num_scalar_prefetch=0,
            grid=grid,
            in_specs=[
                # x: tiled along rows.
                pl.BlockSpec((row_tile, in_p), lambda i: (i, 0)),
                # weights / biases: full arrays, same block every grid step.
                pl.BlockSpec((in_p, emb_p), lambda i: (0, 0)),
                pl.BlockSpec((1, emb_p), lambda i: (0, 0)),
                pl.BlockSpec((emb_p, hid_p), lambda i: (0, 0)),
                pl.BlockSpec((1, hid_p), lambda i: (0, 0)),
                pl.BlockSpec((hid_p, out_p), lambda i: (0, 0)),
                pl.BlockSpec((1, out_p), lambda i: (0, 0)),
            ],
            out_specs=pl.BlockSpec((row_tile, out_p), lambda i: (i, 0)),
        ),
        compiler_params=pltpu.CompilerParams(
            dimension_semantics=("parallel",),
            vmem_limit_bytes=32 * 1024 * 1024),
        cost_estimate=cost,
    )(x2d, w1, b1, w2, b2, w3, b3)

    return out2d[:rows, :output_dim].reshape(batch, seq, output_dim)


# ----------------------------------------------------------------------------
# Deterministic parameter init (matches nn.Linear's U(-1/sqrt(fan_in), ...)
# scheme; synthetic weights, no checkpoint load).
# ----------------------------------------------------------------------------
def init_text_encoder_params(key, input_dim, embed_dim, hidden_dim, output_dim,
                             dtype=jnp.float32):
    ks = jax.random.split(key, 6)

    def _linear(kw, kb, fan_in, fan_out):
        bound = 1.0 / (fan_in ** 0.5)
        w = jax.random.uniform(kw, (fan_in, fan_out), dtype, -bound, bound)
        b = jax.random.uniform(kb, (fan_out,), dtype, -bound, bound)
        return w, b

    w1, b1 = _linear(ks[0], ks[1], input_dim, embed_dim)
    w2, b2 = _linear(ks[2], ks[3], embed_dim, hidden_dim)
    w3, b3 = _linear(ks[4], ks[5], hidden_dim, output_dim)
    return {"w1": w1, "b1": b1, "w2": w2, "b2": b2, "w3": w3, "b3": b3}


def _reference_forward(x, params):
    """Pure-JAX reference for correctness checking."""
    rows = x.shape[0] * x.shape[1]
    h = x.reshape(rows, -1).astype(jnp.float32)
    h = jnp.maximum(h @ params["w1"].astype(jnp.float32)
                    + params["b1"].astype(jnp.float32), 0.0)
    h = jnp.maximum(h @ params["w2"].astype(jnp.float32)
                    + params["b2"].astype(jnp.float32), 0.0)
    y = h @ params["w3"].astype(jnp.float32) + params["b3"].astype(jnp.float32)
    return y.reshape(x.shape[0], x.shape[1], -1).astype(x.dtype)


if __name__ == "__main__":
    # Small shapes consistent with the module's constructor signature.
    batch, seq = 2, 8
    input_dim, embed_dim, hidden_dim, output_dim = 32, 64, 48, 16

    key = jax.random.PRNGKey(0)
    k_x, k_p = jax.random.split(key)

    x = jax.random.normal(k_x, (batch, seq, input_dim), dtype=jnp.float32)
    params = init_text_encoder_params(k_p, input_dim, embed_dim, hidden_dim,
                                      output_dim)

    out = jax.block_until_ready(text_encoder_forward(x, params))
    ref = _reference_forward(x, params)

    assert out.shape == (batch, seq, output_dim), out.shape
    assert jnp.allclose(out, ref, atol=1e-4, rtol=1e-4), "mismatch vs reference"

    print("KERNEL_OK")
</pallas_src>

<mosaic_0001>
module attributes {stable_mosaic.version = 11 : i64} {
  func.func @_text_encoder_kernel(%arg0: i32, %arg1: memref<16x128xf32, #tpu.memory_space<vmem>>, %arg2: memref<128x128xf32, #tpu.memory_space<vmem>>, %arg3: memref<1x128xf32, #tpu.memory_space<vmem>>, %arg4: memref<128x128xf32, #tpu.memory_space<vmem>>, %arg5: memref<1x128xf32, #tpu.memory_space<vmem>>, %arg6: memref<128x128xf32, #tpu.memory_space<vmem>>, %arg7: memref<1x128xf32, #tpu.memory_space<vmem>>, %arg8: memref<16x128xf32, #tpu.memory_space<vmem>>) attributes {dimension_semantics = [#tpu.dimension_semantics<parallel>], iteration_bounds = array<i64: 1>, scalar_prefetch = 0 : i64, scratch_operands = 0 : i64, tpu.core_type = #tpu.core_type<tc>, window_params = [{transform_indices = @transform_0, window_bounds = array<i64: 16, 128>}, {pipeline_mode = #tpu.pipeline_mode<synchronous>, transform_indices = @transform_1, window_bounds = array<i64: 128, 128>}, {pipeline_mode = #tpu.pipeline_mode<synchronous>, transform_indices = @transform_2, window_bounds = array<i64: 1, 128>}, {pipeline_mode = #tpu.pipeline_mode<synchronous>, transform_indices = @transform_3, window_bounds = array<i64: 128, 128>}, {pipeline_mode = #tpu.pipeline_mode<synchronous>, transform_indices = @transform_4, window_bounds = array<i64: 1, 128>}, {pipeline_mode = #tpu.pipeline_mode<synchronous>, transform_indices = @transform_5, window_bounds = array<i64: 128, 128>}, {pipeline_mode = #tpu.pipeline_mode<synchronous>, transform_indices = @transform_6, window_bounds = array<i64: 1, 128>}, {transform_indices = @transform_7, window_bounds = array<i64: 16, 128>}]} {
    %c0 = arith.constant 0 : index
    %c0_0 = arith.constant 0 : index
    %0 = vector.load %arg1[%c0, %c0_0] : memref<16x128xf32, #tpu.memory_space<vmem>>, vector<16x128xf32>
    %c0_1 = arith.constant 0 : index
    %c0_2 = arith.constant 0 : index
    %1 = vector.load %arg2[%c0_1, %c0_2] : memref<128x128xf32, #tpu.memory_space<vmem>>, vector<128x128xf32>
    %cst = arith.constant dense<0.000000e+00> : vector<16x128xf32>
    %2 = tpu.matmul %0, %1, %cst {dimension_numbers = #tpu.dot_dimension_numbers<[1], [0], [0], [1], [0, 0, 1, 1], [], []>} : vector<16x128xf32>, vector<128x128xf32>, vector<16x128xf32> -> vector<16x128xf32>
    %c0_3 = arith.constant 0 : index
    %c0_4 = arith.constant 0 : index
    %3 = vector.load %arg3[%c0_3, %c0_4] : memref<1x128xf32, #tpu.memory_space<vmem>>, vector<1x128xf32>
    %4 = vector.broadcast %3 : vector<1x128xf32> to vector<16x128xf32>
    %5 = arith.addf %2, %4 : vector<16x128xf32>
    %cst_5 = arith.constant 0.000000e+00 : f32
    %6 = vector.broadcast %cst_5 : f32 to vector<16x128xf32>
    %7 = arith.maximumf %5, %6 : vector<16x128xf32>
    %c0_6 = arith.constant 0 : index
    %c0_7 = arith.constant 0 : index
    %8 = vector.load %arg4[%c0_6, %c0_7] : memref<128x128xf32, #tpu.memory_space<vmem>>, vector<128x128xf32>
    %cst_8 = arith.constant dense<0.000000e+00> : vector<16x128xf32>
    %9 = tpu.matmul %7, %8, %cst_8 {dimension_numbers = #tpu.dot_dimension_numbers<[1], [0], [0], [1], [0, 0, 1, 1], [], []>} : vector<16x128xf32>, vector<128x128xf32>, vector<16x128xf32> -> vector<16x128xf32>
    %c0_9 = arith.constant 0 : index
    %c0_10 = arith.constant 0 : index
    %10 = vector.load %arg5[%c0_9, %c0_10] : memref<1x128xf32, #tpu.memory_space<vmem>>, vector<1x128xf32>
    %11 = vector.broadcast %10 : vector<1x128xf32> to vector<16x128xf32>
    %12 = arith.addf %9, %11 : vector<16x128xf32>
    %cst_11 = arith.constant 0.000000e+00 : f32
    %13 = vector.broadcast %cst_11 : f32 to vector<16x128xf32>
    %14 = arith.maximumf %12, %13 : vector<16x128xf32>
    %c0_12 = arith.constant 0 : index
    %c0_13 = arith.constant 0 : index
    %15 = vector.load %arg6[%c0_12, %c0_13] : memref<128x128xf32, #tpu.memory_space<vmem>>, vector<128x128xf32>
    %cst_14 = arith.constant dense<0.000000e+00> : vector<16x128xf32>
    %16 = tpu.matmul %14, %15, %cst_14 {dimension_numbers = #tpu.dot_dimension_numbers<[1], [0], [0], [1], [0, 0, 1, 1], [], []>} : vector<16x128xf32>, vector<128x128xf32>, vector<16x128xf32> -> vector<16x128xf32>
    %c0_15 = arith.constant 0 : index
    %c0_16 = arith.constant 0 : index
    %17 = vector.load %arg7[%c0_15, %c0_16] : memref<1x128xf32, #tpu.memory_space<vmem>>, vector<1x128xf32>
    %18 = vector.broadcast %17 : vector<1x128xf32> to vector<16x128xf32>
    %19 = arith.addf %16, %18 : vector<16x128xf32>
    %c0_17 = arith.constant 0 : index
    %c0_18 = arith.constant 0 : index
    %20 = vector.load %arg8[%c0_17, %c0_18] : memref<16x128xf32, #tpu.memory_space<vmem>>, vector<16x128xf32>
    tpu.vector_store %arg8[%c0_17, %c0_18], %19 {strides = array<i32>} : memref<16x128xf32, #tpu.memory_space<vmem>>, vector<16x128xf32>,
    return
  }
  func.func @transform_0(%arg0: i32) -> (i32, i32) {
    %c0_i32 = arith.constant 0 : i32
    %c0_i32_0 = arith.constant 0 : i32
    return %arg0, %c0_i32 : i32, i32
  }
  func.func @transform_1(%arg0: i32) -> (i32, i32) {
    %c0_i32 = arith.constant 0 : i32
    %c0_i32_0 = arith.constant 0 : i32
    %c0_i32_1 = arith.constant 0 : i32
    return %c0_i32, %c0_i32_0 : i32, i32
  }
  func.func @transform_2(%arg0: i32) -> (i32, i32) {
    %c0_i32 = arith.constant 0 : i32
    %c0_i32_0 = arith.constant 0 : i32
    %c0_i32_1 = arith.constant 0 : i32
    return %c0_i32, %c0_i32_0 : i32, i32
  }
  func.func @transform_3(%arg0: i32) -> (i32, i32) {
    %c0_i32 = arith.constant 0 : i32
    %c0_i32_0 = arith.constant 0 : i32
    %c0_i32_1 = arith.constant 0 : i32
    return %c0_i32, %c0_i32_0 : i32, i32
  }
  func.func @transform_4(%arg0: i32) -> (i32, i32) {
    %c0_i32 = arith.constant 0 : i32
    %c0_i32_0 = arith.constant 0 : i32
    %c0_i32_1 = arith.constant 0 : i32
    return %c0_i32, %c0_i32_0 : i32, i32
  }
  func.func @transform_5(%arg0: i32) -> (i32, i32) {
    %c0_i32 = arith.constant 0 : i32
    %c0_i32_0 = arith.constant 0 : i32
    %c0_i32_1 = arith.constant 0 : i32
    return %c0_i32, %c0_i32_0 : i32, i32
  }
  func.func @transform_6(%arg0: i32) -> (i32, i32) {
    %c0_i32 = arith.constant 0 : i32
    %c0_i32_0 = arith.constant 0 : i32
    %c0_i32_1 = arith.constant 0 : i32
    return %c0_i32, %c0_i32_0 : i32, i32
  }
  func.func @transform_7(%arg0: i32) -> (i32, i32) {
    %c0_i32 = arith.constant 0 : i32
    %c0_i32_0 = arith.constant 0 : i32
    return %arg0, %c0_i32 : i32, i32
  }
}

</mosaic_0001>

<bundles_post_ra>
// kernel: text_encoder_forward.1
= control target key start
LH: loop header
LB: loop body
LE: loop exit
PB: predicated region body
PF: predicated region fallthrough
CT: control target
= control target key end

     0   :  { %s795_s1 = inlined_call_operand.vmem [shape: f32[128,128], index: 1, kind: input, shape index: {}]   ;;  %s796_s0 = inlined_call_operand.vmem [shape: f32[16,128], index: 0, kind: input, shape index: {}]   ;;  %s797_s3 = inlined_call_operand.vmem [shape: f32[128,128], index: 3, kind: input, shape index: {}]   ;;  %s798_s5 = inlined_call_operand.vmem [shape: f32[128,128], index: 5, kind: input, shape index: {}]   ;;  %s799_s2 = inlined_call_operand.vmem [shape: f32[1,128], index: 2, kind: input, shape index: {}]   ;;  %s800_s4 = inlined_call_operand.vmem [shape: f32[1,128], index: 4, kind: input, shape index: {}]   ;;  %s801_s6 = inlined_call_operand.vmem [shape: f32[1,128], index: 6, kind: input, shape index: {}]   ;;  %s802_s7 = inlined_call_operand.vmem [shape: f32[16,128], index: 7, kind: output, shape index: {}]  }
   0x1   :  { %v28_v0 = vld [vmem:[%s795_s1] sm:$0xff]  ;;  %v29_v1 = vld [vmem:[%s795_s1 + $0x8] sm:$0xff]  ;;  %v30_v2 = vld [vmem:[%s795_s1 + $0x10] sm:$0xff] }
   0x2   :  { %v494_v3 = vpack.c.bf16 %v29_v1, %v28_v0  ;;  %v31_v4 = vld [vmem:[%s795_s1 + $0x18] sm:$0xff]  ;;  %v32_v6 = vld [vmem:[%s795_s1 + $0x20] sm:$0xff]  ;;  %v33_v7 = vld [vmem:[%s795_s1 + $0x28] sm:$0xff] }
   0x3   :  { %v498_v5 = vpack.c.bf16 %v31_v4, %v30_v2  ;;  %v502_v8 = vpack.c.bf16 %v33_v7, %v32_v6  ;;  %v34_v9 = vld [vmem:[%s795_s1 + $0x30] sm:$0xff]  ;;  %v35_v10 = vld [vmem:[%s795_s1 + $0x38] sm:$0xff]  ;;  %v26_v11 = vld [vmem:[%s796_s0] sm:$0xff] }
   0x4   :  { %495 = vmatprep.subr.bf16.mxu0 %v494_v3  ;;  %421 = vmatprep.mubr.f32.mxu0 %v26_v11  ;;  %v128_v12 = vld [vmem:[%s797_s3] sm:$0xff]  ;;  %v129_v13 = vld [vmem:[%s797_s3 + $0x8] sm:$0xff]  ;;  %v130_v14 = vld [vmem:[%s797_s3 + $0x10] sm:$0xff]  ;;  %v506_v20 = vpack.c.bf16 %v35_v10, %v34_v9 }
   0x5   :  { %497 = vmatpush3.bf16.msra.mxu0 %v494_v3  ;;  %v526_v15 = vpack.c.bf16 %v129_v13, %v128_v12  ;;  %v131_v16 = vld [vmem:[%s797_s3 + $0x18] sm:$0xff]  ;;  %v132_v18 = vld [vmem:[%s797_s3 + $0x20] sm:$0xff]  ;;  %v133_v19 = vld [vmem:[%s797_s3 + $0x28] sm:$0xff] }
   0x6   :  { %499 = vmatprep.subr.bf16.mxu0 %v498_v5  ;;  %v530_v17 = vpack.c.bf16 %v131_v16, %v130_v14  ;;  %v36_v21 = vld [vmem:[%s795_s1 + $0x40] sm:$0xff]  ;;  %v37_v22 = vld [vmem:[%s795_s1 + $0x48] sm:$0xff]  ;;  %v534_v23 = vpack.c.bf16 %v133_v19, %v132_v18  ;;  %v134_v24 = vld [vmem:[%s797_s3 + $0x30] sm:$0xff] }
   0x7   :  { %527 = vmatprep.subr.bf16.mxu1 %v526_v15  ;;  %v135_v25 = vld [vmem:[%s797_s3 + $0x38] sm:$0xff]  ;;  %v510_v26 = vpack.c.bf16 %v37_v22, %v36_v21  ;;  %v38_v27 = vld [vmem:[%s795_s1 + $0x50] sm:$0xff]  ;;  %v136_v30 = vld [vmem:[%s797_s3 + $0x40] sm:$0xff] }
   0x8   :  { %529 = vmatpush3.bf16.msra.mxu1 %v526_v15  ;;  %v39_v28 = vld [vmem:[%s795_s1 + $0x58] sm:$0xff]  ;;  %v538_v29 = vpack.c.bf16 %v135_v25, %v134_v24  ;;  %v137_v31 = vld [vmem:[%s797_s3 + $0x48] sm:$0xff]  ;;  %v40_v33 = vld [vmem:[%s795_s1 + $0x60] sm:$0xff] }
   0x9   :  { %501 = vmatpush3.bf16.msra.mxu0 %v498_v5  ;;  %531 = vmatprep.subr.bf16.mxu1 %v530_v17  ;;  %v514_v32 = vpack.c.bf16 %v39_v28, %v38_v27  ;;  %v41_v34 = vld [vmem:[%s795_s1 + $0x68] sm:$0xff]  ;;  %v542_v35 = vpack.c.bf16 %v137_v31, %v136_v30  ;;  %v138_v36 = vld [vmem:[%s797_s3 + $0x50] sm:$0xff]  ;;  %v139_v37 = vld [vmem:[%s797_s3 + $0x58] sm:$0xff] }
   0xa   :  { %503 = vmatprep.subr.bf16.mxu0 %v502_v8  ;;  %v518_v38 = vpack.c.bf16 %v41_v34, %v40_v33  ;;  %v42_v39 = vld [vmem:[%s795_s1 + $0x70] sm:$0xff]  ;;  %v43_v40 = vld [vmem:[%s795_s1 + $0x78] sm:$0xff]  ;;  %v546_v41 = vpack.c.bf16 %v139_v37, %v138_v36  ;;  %v140_v42 = vld [vmem:[%s797_s3 + $0x60] sm:$0xff] }
   0xb   :  { %v141_v43 = vld [vmem:[%s797_s3 + $0x68] sm:$0xff]  ;;  %v522_v44 = vpack.c.bf16 %v43_v40, %v42_v39  ;;  %v142_v47 = vld [vmem:[%s797_s3 + $0x70] sm:$0xff]  ;;  %v143_v48 = vld [vmem:[%s797_s3 + $0x78] sm:$0xff] }
   0xc   :  { %533 = vmatpush3.bf16.msra.mxu1 %v530_v17  ;;  %v550_v45 = vpack.c.bf16 %v141_v43, %v140_v42  ;;  %v27_v46 = vld [vmem:[%s796_s0 + $0x8] sm:$0xff]  ;;  %v554_v49 = vpack.c.bf16 %v143_v48, %v142_v47  ;;  %v228_v50 = vld [vmem:[%s798_s5] sm:$0xff]  ;;  %v230_v52 = vld [vmem:[%s798_s5 + $0x10] sm:$0xff] }
   0xd   :  { %505 = vmatpush3.bf16.msra.mxu0 %v502_v8  ;;  %535 = vmatprep.subr.bf16.mxu1 %v534_v23  ;;  %v229_v51 = vld [vmem:[%s798_s5 + $0x8] sm:$0xff]  ;;  %v231_v54 = vld [vmem:[%s798_s5 + $0x18] sm:$0xff]  ;;  %v232_v56 = vld [vmem:[%s798_s5 + $0x20] sm:$0xff] }
   0xe   :  { %507 = vmatprep.subr.bf16.mxu0 %v506_v20  ;;  %v558_v53 = vpack.c.bf16 %v229_v51, %v228_v50  ;;  %v562_v55 = vpack.c.bf16 %v231_v54, %v230_v52  ;;  %v233_v57 = vld [vmem:[%s798_s5 + $0x28] sm:$0xff]  ;;  %v234_v59 = vld [vmem:[%s798_s5 + $0x30] sm:$0xff]  ;;  %v235_v60 = vld [vmem:[%s798_s5 + $0x38] sm:$0xff] }
   0xf   :  { %v566_v58 = vpack.c.bf16 %v233_v57, %v232_v56  ;;  %v570_v61 = vpack.c.bf16 %v235_v60, %v234_v59  ;;  %v236_v62 = vld [vmem:[%s798_s5 + $0x40] sm:$0xff]  ;;  %v237_v63 = vld [vmem:[%s798_s5 + $0x48] sm:$0xff]  ;;  %v238_v1 = vld [vmem:[%s798_s5 + $0x50] sm:$0xff] }
  0x10   :  { %537 = vmatpush3.bf16.msra.mxu1 %v534_v23  ;;  %v574_v0 = vpack.c.bf16 %v237_v63, %v236_v62  ;;  %v239_v2 = vld [vmem:[%s798_s5 + $0x58] sm:$0xff]  ;;  %v240_v4 = vld [vmem:[%s798_s5 + $0x60] sm:$0xff]  ;;  %v241_v5 = vld [vmem:[%s798_s5 + $0x68] sm:$0xff] }
  0x11   :  { %509 = vmatpush3.bf16.msra.mxu0 %v506_v20  ;;  %539 = vmatprep.subr.bf16.mxu1 %v538_v29  ;;  %v578_v3 = vpack.c.bf16 %v239_v2, %v238_v1  ;;  %v582_v6 = vpack.c.bf16 %v241_v5, %v240_v4  ;;  %v332_v7 = vld [vmem:[%s799_s2] ss:$0 sm:$0xff]  ;;  %v242_v14 = vld [vmem:[%s798_s5 + $0x70] sm:$0xff]  ;;  %v243_v15 = vld [vmem:[%s798_s5 + $0x78] sm:$0xff] }
  0x12   :  { %511 = vmatprep.subr.bf16.mxu0 %v510_v26  ;;  %v586_v16 = vpack.c.bf16 %v243_v15, %v242_v14  ;;  %v333_v17 = vld [vmem:[%s800_s4] ss:$0 sm:$0xff] }
  0x13   :  { %v334_v24 = vld [vmem:[%s801_s6] ss:$0 sm:$0xff] }
  0x14   :  { %541 = vmatpush3.bf16.msra.mxu1 %v538_v29 }
  0x15   :  { %513 = vmatpush3.bf16.msra.mxu0 %v510_v26  ;;  %543 = vmatprep.subr.bf16.mxu1 %v542_v35 }
  0x16   :  { %515 = vmatprep.subr.bf16.mxu0 %v514_v32 }
  0x18   :  { %545 = vmatpush3.bf16.msra.mxu1 %v542_v35 }
  0x19   :  { %517 = vmatpush3.bf16.msra.mxu0 %v514_v32  ;;  %547 = vmatprep.subr.bf16.mxu1 %v546_v41 }
  0x1a   :  { %519 = vmatprep.subr.bf16.mxu0 %v518_v38 }
  0x1c   :  { %549 = vmatpush3.bf16.msra.mxu1 %v546_v41 }
  0x1d   :  { %521 = vmatpush3.bf16.msra.mxu0 %v518_v38  ;;  %551 = vmatprep.subr.bf16.mxu1 %v550_v45 }
  0x1e   :  { %523 = vmatprep.subr.bf16.mxu0 %v522_v44 }
  0x20   :  { %553 = vmatpush3.bf16.msra.mxu1 %v550_v45 }
  0x21   :  { %525 = vmatpush3.bf16.msra.mxu0 %v522_v44  ;;  %555 = vmatprep.subr.bf16.mxu1 %v554_v49 }
  0x22   :  { %559 = vmatprep.subr.bf16.mxu0 %v558_v53 }
  0x24   :  { %422 = vmatmul.mubr.f32.vlgmr.msra.gmra.mrb[0].mxu0 %v27_v46  ;;  %557 = vmatpush3.bf16.msra.mxu1 %v554_v49 }
  0x25   :  { %561 = vmatpush3.bf16.msra.mxu0 %v558_v53 }
  0x26   :  { %563 = vmatprep.subr.bf16.mxu0 %v562_v55 }
  0x29   :  { %565 = vmatpush3.bf16.msra.mxu0 %v562_v55 }
  0x2a   :  { %567 = vmatprep.subr.bf16.mxu0 %v566_v58 }
  0x2d   :  { %569 = vmatpush3.bf16.msra.mxu0 %v566_v58 }
  0x2e   :  { %571 = vmatprep.subr.bf16.mxu0 %v570_v61 }
  0x31   :  { %573 = vmatpush3.bf16.msra.mxu0 %v570_v61 }
  0x32   :  { %575 = vmatprep.subr.bf16.mxu0 %v574_v0 }
  0x35   :  { %577 = vmatpush3.bf16.msra.mxu0 %v574_v0 }
  0x36   :  { %579 = vmatprep.subr.bf16.mxu0 %v578_v3 }
  0x39   :  { %581 = vmatpush3.bf16.msra.mxu0 %v578_v3 }
  0x3a   :  { %583 = vmatprep.subr.bf16.mxu0 %v582_v6 }
  0x3d   :  { %585 = vmatpush3.bf16.msra.mxu0 %v582_v6 }
  0x3e   :  { %587 = vmatprep.subr.bf16.mxu0 %v586_v16 }
  0x41   :  { %589 = vmatpush3.bf16.msra.mxu0 %v586_v16 }
  0xf7   :  { %v423_v8 = vpop.f32.mrb[0].mxu0 }
  0xf8   :  { %v123_v9 = vadd.f32 %v423_v8, %v332_v7  ;;  %v117_v10 = vpop.f32.mrb[1].mxu0 }
  0xf9   :  { %v118_v11 = vadd.f32 %v332_v7, %v117_v10 }
  0xfa   :  { %v127_v13 = vmax.f32 %v123_v9, 0.0 }
  0xfb   :  { %v126_v12 = vmax.f32 %v118_v11, 0.0 }
  0xfd   :  { %456 = vmatprep.mubr.f32.mxu1 %v126_v12 }
  0xfe   :  { %457 = vmatmul.mubr.f32.vlgmr.msra.gmra.mrb[0].mxu1 %v127_v13 }
 0x1d1   :  { %v458_v18 = vpop.f32.mrb[0].mxu1 }
 0x1d2   :  { %v223_v19 = vadd.f32 %v458_v18, %v333_v17  ;;  %v217_v20 = vpop.f32.mrb[1].mxu1 }
 0x1d3   :  { %v218_v21 = vadd.f32 %v333_v17, %v217_v20 }
 0x1d4   :  { %v227_v23 = vmax.f32 %v223_v19, 0.0 }
 0x1d5   :  { %v226_v22 = vmax.f32 %v218_v21, 0.0 }
 0x1d7   :  { %491 = vmatprep.mubr.f32.mxu0 %v226_v22 }
 0x1d8   :  { %492 = vmatmul.mubr.f32.vlgmr.msra.gmra.mrb[2].mxu0 %v227_v23 }
 0x2ab   :  { %v493_v25 = vpop.f32.mrb[2].mxu0 }
 0x2ac   :  { %v323_v26 = vadd.f32 %v493_v25, %v334_v24  ;;  %v317_v27 = vpop.f32.mrb[3].mxu0 }
 0x2ad   :  { %v318_v28 = vadd.f32 %v334_v24, %v317_v27 }
 0x2ae   :  { %327 = vst [vmem:[%s802_s7 + $0x8] sm:$0xff] %v323_v26 }
 0x2af   :  { %326 = vst [vmem:[%s802_s7] sm:$0xff] %v318_v28 }

</bundles_post_ra>
